<compile_context>
chip_gen: v5e
topology: v5e:2x2
jax: 0.10.0
libtpu: 0.0.40
codegen_flags: <defaults>
</compile_context>

<pallas_src>
import functools

import jax
import jax.numpy as jnp
from jax.experimental import pallas as pl
from jax.experimental.pallas import tpu as pltpu


def _round_up(x, m):
    return (x + m - 1) // m * m


def _vmem_capacity_bytes():
    try:
        return int(pltpu.get_tpu_info().vmem_capacity_bytes)
    except Exception:                       # pragma: no cover - conservative fallback
        return 64 * 1024 * 1024             # v7x per-TC VMEM (smallest of the fleet)


# ------------------------------ Pallas kernel --------------------------------
def _tap_conv_kernel(x_ref, w_ref, b_ref, o_ref, acc_ref, *, k_taps):
    """Tap-streaming grouped conv:  out = sum_k W_k @ x[:, k : k + L]  + bias.

    x_ref  : (1, 1, cblk, l_in)     bf16  channel-major halo'd input window
    w_ref  : (1, k_taps, co, cblk)  bf16  block-diagonal per-tap weights
    b_ref  : (1, co, 1)             f32   merged (BN-folded) bias
    o_ref  : (1, 1, co, l_out)      out dtype (channels on sublanes, spatial on lanes)
    acc_ref: (co, l_out)            f32   VMEM accumulator scratch
    """
    l_out = acc_ref.shape[1]
    acc_ref[...] = jnp.broadcast_to(b_ref[0], acc_ref.shape)
    for k in range(k_taps):                 # static unroll: K shifted matmuls, no im2col
        acc_ref[...] += jnp.dot(
            w_ref[0, k], x_ref[0, 0, :, k:k + l_out],
            preferred_element_type=jnp.float32)
    o_ref[0, 0] = acc_ref[...].astype(o_ref.dtype)


# ------------------------------- glue (JAX) -----------------------------------
def _fold_bn(weight, bn, eps):
    """Fold inference-mode BatchNorm1d into the (bias-free) conv weight."""
    gamma, beta, mean, var = bn
    scale = gamma / jnp.sqrt(var + eps)                     # [C_out]
    return weight * scale[:, None, None], beta - mean * scale


def init_params(key, in_channels, out_channels, kernel_size, small_kernel, groups):
    """Deterministic synthetic parameters (conv weights + BN params/buffers)."""
    ks = jax.random.split(key, 10)
    c_in_g = in_channels // groups

    def bn(k0, k1, k2, k3):
        gamma = 1.0 + 0.1 * jax.random.normal(k0, (out_channels,), jnp.float32)
        beta = 0.1 * jax.random.normal(k1, (out_channels,), jnp.float32)
        mean = 0.1 * jax.random.normal(k2, (out_channels,), jnp.float32)
        var = jnp.abs(jax.random.normal(k3, (out_channels,), jnp.float32)) + 0.5
        return gamma, beta, mean, var

    return {
        "lkb_w": 0.1 * jax.random.normal(
            ks[0], (out_channels, c_in_g, kernel_size), jnp.float32),
        "lkb_bn": bn(ks[1], ks[2], ks[3], ks[4]),
        "small_w": 0.1 * jax.random.normal(
            ks[5], (out_channels, c_in_g, small_kernel), jnp.float32),
        "small_bn": bn(ks[6], ks[7], ks[8], ks[9]),
    }


@functools.partial(jax.jit, static_argnames=("kernel_size", "small_kernel",
                                             "stride", "groups", "out_dtype"))
def reparam_large_kernel_conv(x, params, *, kernel_size, small_kernel, stride,
                              groups, eps=1e-5, out_dtype=jnp.bfloat16):
    """Forward: out = lkb_origin(x) + small_conv(x)   (inference-mode BN)."""
    n, c_in, l = x.shape
    c_out = params["lkb_w"].shape[0]
    assert c_in % groups == 0 and c_out % groups == 0, "bad groups config"
    assert (kernel_size - small_kernel) % 2 == 0, (
        "kernel_size and small_kernel must have the same parity so the two "
        "branches' outputs align (implicitly required by the reference module)")
    c_in_g = c_in // groups
    out_pg = c_out // groups
    pad = kernel_size // 2
    l_out = (l + 2 * pad - kernel_size) // stride + 1

    # ---- 1. fold BN into each branch and MERGE into one weight + bias -------
    w1, b1 = _fold_bn(params["lkb_w"], params["lkb_bn"], eps)      # [C_out, c_in_g, K]
    w2, b2 = _fold_bn(params["small_w"], params["small_bn"], eps)  # [C_out, c_in_g, ks]
    off = kernel_size // 2 - small_kernel // 2      # center small kernel in the K taps
    w2 = jnp.pad(w2, ((0, 0), (0, 0), (off, kernel_size - small_kernel - off)))
    w_sum = w1 + w2                                  # [C_out, c_in_g, K]
    b_sum = b1 + b2                                  # [C_out]

    # ---- 2. normalise stride > 1 to stride 1 (exact phase decomposition) ----
    s = stride
    k_eff = -(-kernel_size // s)                     # ceil(K / stride)
    c_in_g_eff = c_in_g * s
    if s > 1:
        w_sum = jnp.pad(w_sum, ((0, 0), (0, 0), (0, k_eff * s - kernel_size)))
        w_sum = w_sum.reshape(c_out, c_in_g, k_eff, s).transpose(0, 1, 3, 2)
        w_sum = w_sum.reshape(c_out, c_in_g_eff, k_eff)

    x_p = jnp.pad(x, ((0, 0), (0, 0), (pad, pad)))   # [N, C_in, L + 2*pad], channel-major
    if s > 1:
        l_ps = _round_up(l + 2 * pad, s)
        x_p = jnp.pad(x_p, ((0, 0), (0, 0), (0, l_ps - (l + 2 * pad))))
        x_p = x_p.reshape(n, c_in, l_ps // s, s).transpose(0, 1, 3, 2)
        x_p = x_p.reshape(n, c_in * s, l_ps // s)    # phase channels: (c, r) -> c*s + r

    # ---- 3. pack groups into >=16-sublane output blocks (block-diag weights) -
    sub = 16
    gpb = 1 if out_pg >= sub else min(groups, -(-sub // out_pg))   # groups per block
    g_pad = _round_up(groups, gpb)
    gb = g_pad // gpb                                # number of group blocks
    co_blk = gpb * out_pg
    co_blk_p = _round_up(co_blk, sub)                # output channels per block (sublanes)
    cblk = gpb * c_in_g_eff
    cblk_p = _round_up(cblk, sub)                    # input channels per block (contraction)

    l_out_p = _round_up(l_out, 128)                  # lane-dense output stores
    l_in = l_out_p + k_eff - 1                       # halo'd input window length

    # x -> [N, GB, cblk_p, l_in] bf16 (group-block channel slices are contiguous)
    u = x_p.shape[-1]
    x_p = jnp.pad(x_p, ((0, 0), (0, 0), (0, max(l_in - u, 0))))[:, :, :l_in]
    x_b = x_p.reshape(n, groups, c_in_g_eff, l_in)
    x_b = jnp.pad(x_b, ((0, 0), (0, g_pad - groups), (0, 0), (0, 0)))
    x_b = x_b.reshape(n, gb, cblk, l_in)
    x_b = jnp.pad(x_b, ((0, 0), (0, 0), (0, cblk_p - cblk), (0, 0)))
    x_b = x_b.astype(jnp.bfloat16)

    # weights -> [GB, K_eff, co_blk_p, cblk_p] bf16, block-diagonal over the gpb groups
    w_g = w_sum.reshape(groups, out_pg, c_in_g_eff, k_eff)
    w_g = jnp.pad(w_g, ((0, g_pad - groups), (0, 0), (0, 0), (0, 0)))
    w_g = w_g.reshape(gb, gpb, out_pg, c_in_g_eff, k_eff)
    eye = jnp.eye(gpb, dtype=w_g.dtype)
    w_bd = jnp.einsum("bjoca,jk->bjokca", w_g, eye)          # zero off the block diagonal
    w_bd = w_bd.reshape(gb, co_blk, cblk, k_eff)
    w_bd = jnp.pad(w_bd, ((0, 0), (0, co_blk_p - co_blk), (0, cblk_p - cblk), (0, 0)))
    w_bd = w_bd.transpose(0, 3, 1, 2).astype(jnp.bfloat16)   # [GB, K_eff, co_p, cblk_p]

    # bias -> [GB, co_blk_p, 1] f32
    b_b = b_sum.reshape(groups, out_pg)
    b_b = jnp.pad(b_b, ((0, g_pad - groups), (0, 0))).reshape(gb, co_blk)
    b_b = jnp.pad(b_b, ((0, 0), (0, co_blk_p - co_blk)))
    b_b = b_b.reshape(gb, co_blk_p, 1).astype(jnp.float32)

    # ---- 4. generation-aware VMEM budget (x/out double-buffered, weight single)
    out_bytes = jnp.dtype(out_dtype).itemsize
    need = (2 * cblk_p * l_in * 2                    # x window, bf16, 2 buffers
            + 2 * co_blk_p * l_out_p * out_bytes     # output tile, 2 buffers
            + k_eff * co_blk_p * cblk_p * 2          # weight, Buffered(1)
            + co_blk_p * 4                           # bias, Buffered(1)
            + co_blk_p * l_out_p * 4)                # f32 accumulator scratch
    cap = _vmem_capacity_bytes()
    vmem_limit = int(min(max(need + (4 << 20), 32 << 20),
                         max(cap - (8 << 20), 32 << 20)))

    cost = pl.CostEstimate(
        flops=2 * n * gb * k_eff * co_blk_p * cblk_p * l_out_p,
        transcendentals=0,
        bytes_accessed=int(x_b.size * 2 + w_bd.size * 2 + b_b.size * 4
                           + n * gb * co_blk_p * l_out_p * out_bytes))

    kernel = functools.partial(_tap_conv_kernel, k_taps=k_eff)
    out_b = pl.pallas_call(
        kernel,
        out_shape=jax.ShapeDtypeStruct((n, gb, co_blk_p, l_out_p), out_dtype),
        grid=(gb, n),                    # batch innermost -> weight/bias are revisited
        in_specs=[
            pl.BlockSpec((1, 1, cblk_p, l_in), lambda g, b: (b, g, 0, 0)),
            pl.BlockSpec((1, k_eff, co_blk_p, cblk_p), lambda g, b: (g, 0, 0, 0),
                         pipeline_mode=pl.Buffered(1)),
            pl.BlockSpec((1, co_blk_p, 1), lambda g, b: (g, 0, 0),
                         pipeline_mode=pl.Buffered(1)),
        ],
        out_specs=pl.BlockSpec((1, 1, co_blk_p, l_out_p), lambda g, b: (b, g, 0, 0)),
        scratch_shapes=[pltpu.VMEM((co_blk_p, l_out_p), jnp.float32)],
        compiler_params=pltpu.CompilerParams(
            dimension_semantics=("parallel", "parallel"),
            vmem_limit_bytes=vmem_limit),
        cost_estimate=cost,
    )(x_b, w_bd, b_b)

    # ---- 5. strip padding; output is already NCL (no transposes needed) ------
    out = out_b[:, :, :co_blk, :l_out].reshape(n, g_pad * out_pg, l_out)
    return out[:, :c_out, :]


# ------------------------- pure-JAX reference (for check) ---------------------
def _reference(x, params, *, kernel_size, small_kernel, stride, groups, eps=1e-5):
    def branch(w, bn, ksz):
        p = ksz // 2
        y = jax.lax.conv_general_dilated(
            x, w, window_strides=(stride,), padding=[(p, p)],
            dimension_numbers=("NCH", "OIH", "NCH"),
            feature_group_count=groups)
        gamma, beta, mean, var = bn
        sc = gamma / jnp.sqrt(var + eps)
        return y * sc[None, :, None] + (beta - mean * sc)[None, :, None]
    return (branch(params["lkb_w"], params["lkb_bn"], kernel_size)
            + branch(params["small_w"], params["small_bn"], small_kernel))


if __name__ == "__main__":
    # Small shapes consistent with the module's Conv1d forward (NCL layout).
    N, C_IN, C_OUT, L = 2, 4, 8, 16
    KERNEL_SIZE, SMALL_KERNEL, STRIDE, GROUPS = 7, 3, 1, 2

    key = jax.random.PRNGKey(0)
    k_x, k_p = jax.random.split(key)
    x = jax.random.normal(k_x, (N, C_IN, L), jnp.float32)
    params = init_params(k_p, C_IN, C_OUT, KERNEL_SIZE, SMALL_KERNEL, GROUPS)

    out = reparam_large_kernel_conv(
        x, params, kernel_size=KERNEL_SIZE, small_kernel=SMALL_KERNEL,
        stride=STRIDE, groups=GROUPS)
    out = jax.block_until_ready(out)
    assert out.shape == (N, C_OUT, L), out.shape

    ref = _reference(x, params, kernel_size=KERNEL_SIZE,
                     small_kernel=SMALL_KERNEL, stride=STRIDE, groups=GROUPS)
    # bf16 operands + bf16 output -> allow slightly looser tolerance than f32.
    err = float(jnp.max(jnp.abs(out.astype(jnp.float32) - ref)))
    assert err < 7.5e-2, f"max abs err vs reference: {err}"
    print("KERNEL_OK")
</pallas_src>

<mosaic_0001>
module attributes {stable_mosaic.version = 11 : i64} {
  func.func @_tap_conv_kernel(%arg0: i32, %arg1: i32, %arg2: memref<1x1x16x134xbf16, #tpu.memory_space<vmem>>, %arg3: memref<1x7x16x16xbf16, #tpu.memory_space<vmem>>, %arg4: memref<1x16x1xf32, #tpu.memory_space<vmem>>, %arg5: memref<1x1x16x128xbf16, #tpu.memory_space<vmem>>, %arg6: memref<16x128xf32, #tpu.memory_space<vmem>>) attributes {dimension_semantics = [#tpu.dimension_semantics<parallel>, #tpu.dimension_semantics<parallel>], iteration_bounds = array<i64: 1, 2>, scalar_prefetch = 0 : i64, scratch_operands = 1 : i64, tpu.core_type = #tpu.core_type<tc>, window_params = [{transform_indices = @transform_0, window_bounds = array<i64: 1, 1, 16, 134>}, {pipeline_mode = #tpu.pipeline_mode<synchronous>, transform_indices = @transform_1, window_bounds = array<i64: 1, 7, 16, 16>}, {pipeline_mode = #tpu.pipeline_mode<synchronous>, transform_indices = @transform_2, window_bounds = array<i64: 1, 16, 1>}, {transform_indices = @transform_3, window_bounds = array<i64: 1, 1, 16, 128>}]} {
    %c0 = arith.constant 0 : index
    %c0_0 = arith.constant 0 : index
    %c0_1 = arith.constant 0 : index
    %0 = vector.load %arg4[%c0, %c0_0, %c0_1] : memref<1x16x1xf32, #tpu.memory_space<vmem>>, vector<1x16x1xf32>
    %1 = vector.shape_cast %0 : vector<1x16x1xf32> to vector<16x1xf32>
    %2 = vector.shape_cast %1 : vector<16x1xf32> to vector<16x1xf32>
    %3 = vector.broadcast %2 : vector<16x1xf32> to vector<16x128xf32>
    %c0_2 = arith.constant 0 : index
    %c0_3 = arith.constant 0 : index
    %4 = vector.load %arg6[%c0_2, %c0_3] : memref<16x128xf32, #tpu.memory_space<vmem>>, vector<16x128xf32>
    tpu.vector_store %arg6[%c0_2, %c0_3], %3 {strides = array<i32>} : memref<16x128xf32, #tpu.memory_space<vmem>>, vector<16x128xf32>,
    %c0_4 = arith.constant 0 : index
    %c0_5 = arith.constant 0 : index
    %5 = vector.load %arg6[%c0_4, %c0_5] : memref<16x128xf32, #tpu.memory_space<vmem>>, vector<16x128xf32>
    %c0_6 = arith.constant 0 : index
    %c0_7 = arith.constant 0 : index
    %c0_8 = arith.constant 0 : index
    %c0_9 = arith.constant 0 : index
    %6 = vector.load %arg3[%c0_6, %c0_7, %c0_8, %c0_9] : memref<1x7x16x16xbf16, #tpu.memory_space<vmem>>, vector<1x1x16x16xbf16>
    %7 = vector.shape_cast %6 : vector<1x1x16x16xbf16> to vector<16x16xbf16>
    %c0_10 = arith.constant 0 : index
    %c0_11 = arith.constant 0 : index
    %c0_12 = arith.constant 0 : index
    %c0_13 = arith.constant 0 : index
    %8 = vector.load %arg2[%c0_10, %c0_11, %c0_12, %c0_13] : memref<1x1x16x134xbf16, #tpu.memory_space<vmem>>, vector<1x1x16x128xbf16>
    %9 = vector.shape_cast %8 : vector<1x1x16x128xbf16> to vector<16x128xbf16>
    %cst = arith.constant dense<0.000000e+00> : vector<16x128xf32>
    %10 = tpu.matmul %7, %9, %cst {dimension_numbers = #tpu.dot_dimension_numbers<[1], [0], [0], [1], [0, 0, 1, 1], [], []>} : vector<16x16xbf16>, vector<16x128xbf16>, vector<16x128xf32> -> vector<16x128xf32>
    %11 = arith.addf %5, %10 : vector<16x128xf32>
    %c0_14 = arith.constant 0 : index
    %c0_15 = arith.constant 0 : index
    %12 = vector.load %arg6[%c0_14, %c0_15] : memref<16x128xf32, #tpu.memory_space<vmem>>, vector<16x128xf32>
    tpu.vector_store %arg6[%c0_14, %c0_15], %11 {strides = array<i32>} : memref<16x128xf32, #tpu.memory_space<vmem>>, vector<16x128xf32>,
    %c0_16 = arith.constant 0 : index
    %c0_17 = arith.constant 0 : index
    %13 = vector.load %arg6[%c0_16, %c0_17] : memref<16x128xf32, #tpu.memory_space<vmem>>, vector<16x128xf32>
    %c0_18 = arith.constant 0 : index
    %c1 = arith.constant 1 : index
    %c0_19 = arith.constant 0 : index
    %c0_20 = arith.constant 0 : index
    %14 = vector.load %arg3[%c0_18, %c1, %c0_19, %c0_20] : memref<1x7x16x16xbf16, #tpu.memory_space<vmem>>, vector<1x1x16x16xbf16>
    %15 = vector.shape_cast %14 : vector<1x1x16x16xbf16> to vector<16x16xbf16>
    %c0_21 = arith.constant 0 : index
    %c0_22 = arith.constant 0 : index
    %c0_23 = arith.constant 0 : index
    %c1_24 = arith.constant 1 : index
    %16 = vector.load %arg2[%c0_21, %c0_22, %c0_23, %c1_24] : memref<1x1x16x134xbf16, #tpu.memory_space<vmem>>, vector<1x1x16x128xbf16>
    %17 = vector.shape_cast %16 : vector<1x1x16x128xbf16> to vector<16x128xbf16>
    %cst_25 = arith.constant dense<0.000000e+00> : vector<16x128xf32>
    %18 = tpu.matmul %15, %17, %cst_25 {dimension_numbers = #tpu.dot_dimension_numbers<[1], [0], [0], [1], [0, 0, 1, 1], [], []>} : vector<16x16xbf16>, vector<16x128xbf16>, vector<16x128xf32> -> vector<16x128xf32>
    %19 = arith.addf %13, %18 : vector<16x128xf32>
    %c0_26 = arith.constant 0 : index
    %c0_27 = arith.constant 0 : index
    %20 = vector.load %arg6[%c0_26, %c0_27] : memref<16x128xf32, #tpu.memory_space<vmem>>, vector<16x128xf32>
    tpu.vector_store %arg6[%c0_26, %c0_27], %19 {strides = array<i32>} : memref<16x128xf32, #tpu.memory_space<vmem>>, vector<16x128xf32>,
    %c0_28 = arith.constant 0 : index
    %c0_29 = arith.constant 0 : index
    %21 = vector.load %arg6[%c0_28, %c0_29] : memref<16x128xf32, #tpu.memory_space<vmem>>, vector<16x128xf32>
    %c0_30 = arith.constant 0 : index
    %c2 = arith.constant 2 : index
    %c0_31 = arith.constant 0 : index
    %c0_32 = arith.constant 0 : index
    %22 = vector.load %arg3[%c0_30, %c2, %c0_31, %c0_32] : memref<1x7x16x16xbf16, #tpu.memory_space<vmem>>, vector<1x1x16x16xbf16>
    %23 = vector.shape_cast %22 : vector<1x1x16x16xbf16> to vector<16x16xbf16>
    %c0_33 = arith.constant 0 : index
    %c0_34 = arith.constant 0 : index
    %c0_35 = arith.constant 0 : index
    %c2_36 = arith.constant 2 : index
    %24 = vector.load %arg2[%c0_33, %c0_34, %c0_35, %c2_36] : memref<1x1x16x134xbf16, #tpu.memory_space<vmem>>, vector<1x1x16x128xbf16>
    %25 = vector.shape_cast %24 : vector<1x1x16x128xbf16> to vector<16x128xbf16>
    %cst_37 = arith.constant dense<0.000000e+00> : vector<16x128xf32>
    %26 = tpu.matmul %23, %25, %cst_37 {dimension_numbers = #tpu.dot_dimension_numbers<[1], [0], [0], [1], [0, 0, 1, 1], [], []>} : vector<16x16xbf16>, vector<16x128xbf16>, vector<16x128xf32> -> vector<16x128xf32>
    %27 = arith.addf %21, %26 : vector<16x128xf32>
    %c0_38 = arith.constant 0 : index
    %c0_39 = arith.constant 0 : index
    %28 = vector.load %arg6[%c0_38, %c0_39] : memref<16x128xf32, #tpu.memory_space<vmem>>, vector<16x128xf32>
    tpu.vector_store %arg6[%c0_38, %c0_39], %27 {strides = array<i32>} : memref<16x128xf32, #tpu.memory_space<vmem>>, vector<16x128xf32>,
    %c0_40 = arith.constant 0 : index
    %c0_41 = arith.constant 0 : index
    %29 = vector.load %arg6[%c0_40, %c0_41] : memref<16x128xf32, #tpu.memory_space<vmem>>, vector<16x128xf32>
    %c0_42 = arith.constant 0 : index
    %c3 = arith.constant 3 : index
    %c0_43 = arith.constant 0 : index
    %c0_44 = arith.constant 0 : index
    %30 = vector.load %arg3[%c0_42, %c3, %c0_43, %c0_44] : memref<1x7x16x16xbf16, #tpu.memory_space<vmem>>, vector<1x1x16x16xbf16>
    %31 = vector.shape_cast %30 : vector<1x1x16x16xbf16> to vector<16x16xbf16>
    %c0_45 = arith.constant 0 : index
    %c0_46 = arith.constant 0 : index
    %c0_47 = arith.constant 0 : index
    %c3_48 = arith.constant 3 : index
    %32 = vector.load %arg2[%c0_45, %c0_46, %c0_47, %c3_48] : memref<1x1x16x134xbf16, #tpu.memory_space<vmem>>, vector<1x1x16x128xbf16>
    %33 = vector.shape_cast %32 : vector<1x1x16x128xbf16> to vector<16x128xbf16>
    %cst_49 = arith.constant dense<0.000000e+00> : vector<16x128xf32>
    %34 = tpu.matmul %31, %33, %cst_49 {dimension_numbers = #tpu.dot_dimension_numbers<[1], [0], [0], [1], [0, 0, 1, 1], [], []>} : vector<16x16xbf16>, vector<16x128xbf16>, vector<16x128xf32> -> vector<16x128xf32>
    %35 = arith.addf %29, %34 : vector<16x128xf32>
    %c0_50 = arith.constant 0 : index
    %c0_51 = arith.constant 0 : index
    %36 = vector.load %arg6[%c0_50, %c0_51] : memref<16x128xf32, #tpu.memory_space<vmem>>, vector<16x128xf32>
    tpu.vector_store %arg6[%c0_50, %c0_51], %35 {strides = array<i32>} : memref<16x128xf32, #tpu.memory_space<vmem>>, vector<16x128xf32>,
    %c0_52 = arith.constant 0 : index
    %c0_53 = arith.constant 0 : index
    %37 = vector.load %arg6[%c0_52, %c0_53] : memref<16x128xf32, #tpu.memory_space<vmem>>, vector<16x128xf32>
    %c0_54 = arith.constant 0 : index
    %c4 = arith.constant 4 : index
    %c0_55 = arith.constant 0 : index
    %c0_56 = arith.constant 0 : index
    %38 = vector.load %arg3[%c0_54, %c4, %c0_55, %c0_56] : memref<1x7x16x16xbf16, #tpu.memory_space<vmem>>, vector<1x1x16x16xbf16>
    %39 = vector.shape_cast %38 : vector<1x1x16x16xbf16> to vector<16x16xbf16>
    %c0_57 = arith.constant 0 : index
    %c0_58 = arith.constant 0 : index
    %c0_59 = arith.constant 0 : index
    %c4_60 = arith.constant 4 : index
    %40 = vector.load %arg2[%c0_57, %c0_58, %c0_59, %c4_60] : memref<1x1x16x134xbf16, #tpu.memory_space<vmem>>, vector<1x1x16x128xbf16>
    %41 = vector.shape_cast %40 : vector<1x1x16x128xbf16> to vector<16x128xbf16>
    %cst_61 = arith.constant dense<0.000000e+00> : vector<16x128xf32>
    %42 = tpu.matmul %39, %41, %cst_61 {dimension_numbers = #tpu.dot_dimension_numbers<[1], [0], [0], [1], [0, 0, 1, 1], [], []>} : vector<16x16xbf16>, vector<16x128xbf16>, vector<16x128xf32> -> vector<16x128xf32>
    %43 = arith.addf %37, %42 : vector<16x128xf32>
    %c0_62 = arith.constant 0 : index
    %c0_63 = arith.constant 0 : index
    %44 = vector.load %arg6[%c0_62, %c0_63] : memref<16x128xf32, #tpu.memory_space<vmem>>, vector<16x128xf32>
    tpu.vector_store %arg6[%c0_62, %c0_63], %43 {strides = array<i32>} : memref<16x128xf32, #tpu.memory_space<vmem>>, vector<16x128xf32>,
    %c0_64 = arith.constant 0 : index
    %c0_65 = arith.constant 0 : index
    %45 = vector.load %arg6[%c0_64, %c0_65] : memref<16x128xf32, #tpu.memory_space<vmem>>, vector<16x128xf32>
    %c0_66 = arith.constant 0 : index
    %c5 = arith.constant 5 : index
    %c0_67 = arith.constant 0 : index
    %c0_68 = arith.constant 0 : index
    %46 = vector.load %arg3[%c0_66, %c5, %c0_67, %c0_68] : memref<1x7x16x16xbf16, #tpu.memory_space<vmem>>, vector<1x1x16x16xbf16>
    %47 = vector.shape_cast %46 : vector<1x1x16x16xbf16> to vector<16x16xbf16>
    %c0_69 = arith.constant 0 : index
    %c0_70 = arith.constant 0 : index
    %c0_71 = arith.constant 0 : index
    %c5_72 = arith.constant 5 : index
    %48 = vector.load %arg2[%c0_69, %c0_70, %c0_71, %c5_72] : memref<1x1x16x134xbf16, #tpu.memory_space<vmem>>, vector<1x1x16x128xbf16>
    %49 = vector.shape_cast %48 : vector<1x1x16x128xbf16> to vector<16x128xbf16>
    %cst_73 = arith.constant dense<0.000000e+00> : vector<16x128xf32>
    %50 = tpu.matmul %47, %49, %cst_73 {dimension_numbers = #tpu.dot_dimension_numbers<[1], [0], [0], [1], [0, 0, 1, 1], [], []>} : vector<16x16xbf16>, vector<16x128xbf16>, vector<16x128xf32> -> vector<16x128xf32>
    %51 = arith.addf %45, %50 : vector<16x128xf32>
    %c0_74 = arith.constant 0 : index
    %c0_75 = arith.constant 0 : index
    %52 = vector.load %arg6[%c0_74, %c0_75] : memref<16x128xf32, #tpu.memory_space<vmem>>, vector<16x128xf32>
    tpu.vector_store %arg6[%c0_74, %c0_75], %51 {strides = array<i32>} : memref<16x128xf32, #tpu.memory_space<vmem>>, vector<16x128xf32>,
    %c0_76 = arith.constant 0 : index
    %c0_77 = arith.constant 0 : index
    %53 = vector.load %arg6[%c0_76, %c0_77] : memref<16x128xf32, #tpu.memory_space<vmem>>, vector<16x128xf32>
    %c0_78 = arith.constant 0 : index
    %c6 = arith.constant 6 : index
    %c0_79 = arith.constant 0 : index
    %c0_80 = arith.constant 0 : index
    %54 = vector.load %arg3[%c0_78, %c6, %c0_79, %c0_80] : memref<1x7x16x16xbf16, #tpu.memory_space<vmem>>, vector<1x1x16x16xbf16>
    %55 = vector.shape_cast %54 : vector<1x1x16x16xbf16> to vector<16x16xbf16>
    %c0_81 = arith.constant 0 : index
    %c0_82 = arith.constant 0 : index
    %c0_83 = arith.constant 0 : index
    %c6_84 = arith.constant 6 : index
    %56 = vector.load %arg2[%c0_81, %c0_82, %c0_83, %c6_84] : memref<1x1x16x134xbf16, #tpu.memory_space<vmem>>, vector<1x1x16x128xbf16>
    %57 = vector.shape_cast %56 : vector<1x1x16x128xbf16> to vector<16x128xbf16>
    %cst_85 = arith.constant dense<0.000000e+00> : vector<16x128xf32>
    %58 = tpu.matmul %55, %57, %cst_85 {dimension_numbers = #tpu.dot_dimension_numbers<[1], [0], [0], [1], [0, 0, 1, 1], [], []>} : vector<16x16xbf16>, vector<16x128xbf16>, vector<16x128xf32> -> vector<16x128xf32>
    %59 = arith.addf %53, %58 : vector<16x128xf32>
    %c0_86 = arith.constant 0 : index
    %c0_87 = arith.constant 0 : index
    %60 = vector.load %arg6[%c0_86, %c0_87] : memref<16x128xf32, #tpu.memory_space<vmem>>, vector<16x128xf32>
    tpu.vector_store %arg6[%c0_86, %c0_87], %59 {strides = array<i32>} : memref<16x128xf32, #tpu.memory_space<vmem>>, vector<16x128xf32>,
    %c0_88 = arith.constant 0 : index
    %c0_89 = arith.constant 0 : index
    %61 = vector.load %arg6[%c0_88, %c0_89] : memref<16x128xf32, #tpu.memory_space<vmem>>, vector<16x128xf32>
    %62 = arith.truncf %61 : vector<16x128xf32> to vector<16x128xbf16>
    %c0_90 = arith.constant 0 : index
    %c0_91 = arith.constant 0 : index
    %c0_92 = arith.constant 0 : index
    %c0_93 = arith.constant 0 : index
    %63 = vector.load %arg5[%c0_90, %c0_91, %c0_92, %c0_93] : memref<1x1x16x128xbf16, #tpu.memory_space<vmem>>, vector<1x1x16x128xbf16>
    %64 = vector.shape_cast %63 : vector<1x1x16x128xbf16> to vector<16x128xbf16>
    %65 = vector.shape_cast %62 : vector<16x128xbf16> to vector<1x1x16x128xbf16>
    tpu.vector_store %arg5[%c0_90, %c0_91, %c0_92, %c0_93], %65 {strides = array<i32>} : memref<1x1x16x128xbf16, #tpu.memory_space<vmem>>, vector<1x1x16x128xbf16>,
    return
  }
  func.func @transform_0(%arg0: i32, %arg1: i32) -> (i32, i32, i32, i32) {
    %c0_i32 = arith.constant 0 : i32
    %c0_i32_0 = arith.constant 0 : i32
    %c0_i32_1 = arith.constant 0 : i32
    return %arg1, %arg0, %c0_i32, %c0_i32_0 : i32, i32, i32, i32
  }
  func.func @transform_1(%arg0: i32, %arg1: i32) -> (i32, i32, i32, i32) {
    %c0_i32 = arith.constant 0 : i32
    %c0_i32_0 = arith.constant 0 : i32
    %c0_i32_1 = arith.constant 0 : i32
    %c0_i32_2 = arith.constant 0 : i32
    return %arg0, %c0_i32, %c0_i32_0, %c0_i32_1 : i32, i32, i32, i32
  }
  func.func @transform_2(%arg0: i32, %arg1: i32) -> (i32, i32, i32) {
    %c0_i32 = arith.constant 0 : i32
    %c0_i32_0 = arith.constant 0 : i32
    %c0_i32_1 = arith.constant 0 : i32
    return %arg0, %c0_i32, %c0_i32_0 : i32, i32, i32
  }
  func.func @transform_3(%arg0: i32, %arg1: i32) -> (i32, i32, i32, i32) {
    %c0_i32 = arith.constant 0 : i32
    %c0_i32_0 = arith.constant 0 : i32
    %c0_i32_1 = arith.constant 0 : i32
    return %arg1, %arg0, %c0_i32, %c0_i32_0 : i32, i32, i32, i32
  }
}

</mosaic_0001>

<bundles_post_ra>
// kernel: reparam_large_kernel_conv.1
= control target key start
LH: loop header
LB: loop body
LE: loop exit
PB: predicated region body
PF: predicated region fallthrough
CT: control target
= control target key end

     0   :  { %s941_s12 = smov 0   ;;  %s943_s13 = smov 0   ;;  %s1040_s0 = inlined_call_operand.vmem [shape: bf16[2,1,16,134], index: 0, kind: input, shape index: {}]   ;;  %s1041_s1 = inlined_call_operand.vmem [shape: bf16[1,7,16,16], index: 1, kind: input, shape index: {}]   ;;  %s1042_s2 = inlined_call_operand.vmem [shape: f32[1,16,1], index: 2, kind: input, shape index: {}]   ;;  %s1043_s3 = inlined_call_operand.vmem [shape: bf16[2,1,16,128], index: 3, kind: output, shape index: {}]  }
   0x1   :  { %s945_s14 = smov 0  }
   0x2 LB: > { %s22_s15 = sadd.s32 1, %s908_s13  ;;  %p724_p0 = scmp.ge.s32.totalorder %s912_s14, 1  ;;  %s912_s14 = sphi %s945_s14, %s13_s14   ;;  %s908_s13 = sphi %s943_s13, %s1045_s13   ;;  %s904_s12 = sphi %s941_s12, %s1044_s12  }
   0x3   : > { %p23_p1 = scmp.ge.s32.totalorder %s22_s15, 2  ;;  %p177_p2 = scmp.lt.s32.totalorder %s912_s14, 3 }
   0x5   : > { %s1047_s15 = smov (%p23_p1, %s22_s15), 0  ;;  %p178_p3 = pnand %p724_p0, %p177_p2 }
   0x6   : > { %p219_p4 = scmp.lt.s32.totalorder (!%p178_p3), %s904_s12, 1  ;;  %s914_s20 = smov (!%p178_p3), 126  }
   0x7   : > { %181 = sbr.rel (%p178_p3) target bundleno = 306 (0x132), region = 32  ;;  %s915_s21 = smov (!%p178_p3), 127  }
   0x8   : > { %s916_s22 = smov (!%p178_p3), 125   ;;  %s917_s23 = smov (!%p178_p3), 122  }
   0x9   : > { %s918_s24 = smov (!%p178_p3), 124   ;;  %s919_s25 = smov (!%p178_p3), 123  }
   0xc   : > { %s1049_s12 = smov (!%p219_p4, %s904_s12), 1  ;;  %v832_v39 = vld [vmem:[%s1041_s1] sm:$0xff]  ;;  %vm279_vm0 = vcmask 130048   ;;  %vm421_vm1 = vcmask 1022976   ;;  %v840_v43 = vld [vmem:[%s1041_s1 + $0x18] sm:$0xff]  ;;  %v920_v44 = vmov 0  }
   0xd   : > { %s830_s16 = sshll.u32 %s1049_s12, 4  ;;  %889 = vset.pattern.permute.xlu1 %v920_v44  ;;  %888 = vset.pattern.permute.xlu0 %v920_v44  ;;  %v248_v45 = vld [vmem:[%s1042_s2] sm:$0xff]  ;;  %v249_v46 = vld [vmem:[%s1042_s2 + $0x8] sm:$0xff]  ;;  %vm373_vm2 = vcmask 1031168   ;;  %vm325_vm3 = vcmask 1039360   ;;  %v837_v52 = vld [vmem:[%s1041_s1 + $0x10] sm:$0xff] }
   0xe   : > { %s965_s19 = scalar_lea.vmem %s1040_s0, %s830_s16  ;;  %v834_v54 = vld [vmem:[%s1041_s1 + $0x8] sm:$0xff]  ;;  %vm565_vm4 = vcmask 998400   ;;  %vm469_vm5 = vcmask 1014784   ;;  %vm517_vm6 = vcmask 1006592   ;;  %v843_v63 = vld [vmem:[%s1041_s1 + $0x20] sm:$0xff] }
   0xf   : > { %v761_v0 = vld [vmem:[%s965_s19] sm:$0xf]  ;;  %v839_v1 = vld [vmem:[%s965_s19 + $0x4] sm:$0xf0]  ;;  %v838_v6 = vld [vmem:[%s965_s19 + $0x4] sm:$0xf] }
  0x10   : > { %v746_v2 = vld [vmem:[%s965_s19] sm:$0xf]  ;;  %v762_v3 = vor.u32 %v839_v1, %v761_v0  ;;  %v836_v4 = vld [vmem:[%s965_s19 + $0x4] sm:$0xf0]  ;;  %v763_v7 = vld [vmem:[%s965_s19 + $0x8] sm:$0xf0] }
  0x11   : > { %v747_v5 = vor.u32 %v836_v4, %v746_v2  ;;  %v776_v8 = vld [vmem:[%s965_s19] sm:$0xf]  ;;  %v842_v9 = vld [vmem:[%s965_s19 + $0x4] sm:$0xf0]  ;;  %v835_v10 = vld [vmem:[%s965_s19 + $0x4] sm:$0xf]  ;;  %v766_v13 = vor.u32 %v838_v6, %v763_v7 }
  0x12   : > { %369 = vrot.lane.b32.xlu0 %v762_v3, %s914_s20  ;;  %v748_v11 = vld [vmem:[%s965_s19 + $0x8] sm:$0xf0]  ;;  %v777_v12 = vor.u32 %v842_v9, %v776_v8  ;;  %v841_v15 = vld [vmem:[%s965_s19 + $0x4] sm:$0xf]  ;;  %v821_v18 = vld [vmem:[%s965_s19] sm:$0xf] }
  0x13   : > { %321 = vrot.lane.b32.xlu1 %v747_v5, %s915_s21  ;;  %v751_v14 = vor.u32 %v835_v10, %v748_v11  ;;  %v778_v16 = vld [vmem:[%s965_s19 + $0x8] sm:$0xf0]  ;;  %v851_v19 = vld [vmem:[%s965_s19 + $0x4] sm:$0xf0]  ;;  %v850_v20 = vld [vmem:[%s965_s19 + $0x4] sm:$0xf] }
  0x14   : > { %417 = vrot.lane.b32.xlu2 %v777_v12, %s916_s22  ;;  %v781_v17 = vor.u32 %v841_v15, %v778_v16  ;;  %v823_v21 = vld [vmem:[%s965_s19 + $0x8] sm:$0xf0]  ;;  %v822_v22 = vor.u32 %v851_v19, %v821_v18  ;;  %v791_v24 = vld [vmem:[%s965_s19] sm:$0xf]  ;;  %v845_v25 = vld [vmem:[%s965_s19 + $0x4] sm:$0xf0] }
  0x15   : > { %v826_v23 = vor.u32 %v850_v20, %v823_v21  ;;  %v792_v26 = vor.u32 %v845_v25, %v791_v24  ;;  %v844_v27 = vld [vmem:[%s965_s19 + $0x4] sm:$0xf]  ;;  %v793_v28 = vld [vmem:[%s965_s19 + $0x8] sm:$0xf0]  ;;  %v806_v29 = vld [vmem:[%s965_s19] sm:$0xf] }
  0x16   : > { %v848_v30 = vld [vmem:[%s965_s19 + $0x4] sm:$0xf0]  ;;  %v796_v31 = vor.u32 %v844_v27, %v793_v28  ;;  %v847_v33 = vld [vmem:[%s965_s19 + $0x4] sm:$0xf]  ;;  %v808_v34 = vld [vmem:[%s965_s19 + $0x8] sm:$0xf0] }
  0x17   : > { %v807_v32 = vor.u32 %v848_v30, %v806_v29  ;;  %v811_v35 = vor.u32 %v847_v33, %v808_v34  ;;  %v735_v36 = vld [vmem:[%s965_s19] sm:$0xf]  ;;  %v833_v37 = vld [vmem:[%s965_s19 + $0x4] sm:$0xf0]  ;;  %v849_v0 = vld [vmem:[%s1041_s1 + $0x30] sm:$0xff] }
  0x18   : > { %v736_v38 = vor.u32 %v833_v37, %v735_v36  ;;  %v846_v2 = vld [vmem:[%s1041_s1 + $0x28] sm:$0xff] }
  0x1a   : > { %371 = vrot.lane.b32.xlu0 %v766_v13, %s914_s20  ;;  %290 = vmatpush.bf16.msra.mxu0 %v736_v38 }
  0x1b   : > { %323 = vrot.lane.b32.xlu1 %v751_v14, %s915_s21  ;;  %s831_s21 = sshll.u32 %s1049_s12, 3 }
  0x1c   : > { %419 = vrot.lane.b32.xlu2 %v781_v17, %s916_s22 }
  0x1d   : > { %737 = vmatmul.msk.bf16.vlgmr.msra.gmra.mxu0 %vm279_vm0, %v832_v39 }
  0x22   : > { %561 = vrot.lane.b32.xlu0 %v822_v22, %s917_s23 }
  0x23   : > { %563 = vrot.lane.b32.xlu1 %v826_v23, %s917_s23 }
  0x24   : > { %465 = vrot.lane.b32.xlu2 %v792_v26, %s918_s24 }
  0x2a   : > { %467 = vrot.lane.b32.xlu0 %v796_v31, %s918_s24  ;;  %s246_s24 = scalar_lea.vmem %s1043_s3, %s831_s21 }
  0x2b   : > { %513 = vrot.lane.b32.xlu1 %v807_v32, %s919_s25 }
  0x2c   : > { %515 = vrot.lane.b32.xlu2 %v811_v35, %s919_s25 }
  0x32   : > { %252 = vperm.xlu0 %888, %v248_v45  }
  0x33   : > { %257 = vperm.xlu1 %889, %v249_v46  }
  0x6e   : > { %v418_v40 = vpop.permute.xlu2 %417 }
  0x76   : > { %v420_v41 = vpop.permute.xlu2 %419 }
  0x77   : > { %v422_v42 = vsel %vm421_vm1, %v418_v40, %v420_v41 }
  0x78   : > { %434 = vmatpush.bf16.msra.mxu3 %v422_v42 }
  0x7b   : > { %782 = vmatmul.msk.bf16.vlgmr.msra.gmra.mxu3 %vm279_vm0, %v840_v43 }
  0x7e   : > { %v466_v55 = vpop.permute.xlu2 %465 }
  0x84   : > { %v370_v47 = vpop.permute.xlu0 %369 }
  0x85   : > { %v322_v48 = vpop.permute.xlu1 %321 }
  0x86   : > { %v516_v59 = vpop.permute.xlu2 %515 }
  0x8c   : > { %v372_v49 = vpop.permute.xlu0 %371 }
  0x8d   : > { %v324_v50 = vpop.permute.xlu1 %323  ;;  %v374_v51 = vsel %vm373_vm2, %v370_v47, %v372_v49 }
  0x8e   : > { %v326_v53 = vsel %vm325_vm3, %v322_v48, %v324_v50  ;;  %386 = vmatpush.bf16.msra.mxu2 %v374_v51 }
  0x8f   : > { %338 = vmatpush.bf16.msra.mxu1 %v326_v53 }
  0x91   : > { %767 = vmatmul.msk.bf16.vlgmr.msra.gmra.mxu2 %vm279_vm0, %v837_v52 }
  0x92   : > { %752 = vmatmul.msk.bf16.vlgmr.msra.gmra.mxu1 %vm279_vm0, %v834_v54 }
  0x94   : > { %v562_v56 = vpop.permute.xlu0 %561 }
  0x95   : > { %v564_v57 = vpop.permute.xlu1 %563 }
  0x96   : > { %v566_v58 = vsel %vm565_vm4, %v562_v56, %v564_v57 }
  0x97   : > { %578 = vmatpush.bf16.msrb.mxu2 %v566_v58 }
  0x9a   : > { %v292_v3 = vpop.f32.mrf.mxu0 }
  0x9c   : > { %v468_v60 = vpop.permute.xlu0 %467 }
  0x9d   : > { %v514_v61 = vpop.permute.xlu1 %513  ;;  %v470_v62 = vsel %vm469_vm5, %v466_v55, %v468_v60 }
  0x9e   : > { %482 = vmatpush.bf16.msrb.mxu0 %v470_v62  ;;  %v518_v1 = vsel %vm517_vm6, %v514_v61, %v516_v59 }
  0x9f   : > { %530 = vmatpush.bf16.msrb.mxu1 %v518_v1 }
  0xa1   : > { %797 = vmatmul.msk.bf16.vlgmr.msrb.gmra.mxu0 %vm279_vm0, %v843_v63  ;;  %827 = vmatmul.msk.bf16.vlgmr.msrb.gmra.mxu2 %vm279_vm0, %v849_v0 }
  0xa2   : > { %812 = vmatmul.msk.bf16.vlgmr.msrb.gmra.mxu1 %vm279_vm0, %v846_v2  ;;  %v294_v6 = vpop.f32.mrf.mxu0 }
  0xa4   : > { %v253_v7 = vpop.permute.xlu0 %252 }
  0xa5   : > { %v297_v10 = vadd.f32 %v292_v3, %v253_v7  ;;  %v258_v11 = vpop.permute.xlu1 %257 }
  0xa6   : > { %v298_v14 = vadd.f32 %v294_v6, %v258_v11 }
  0xfe   : > { %v436_v9 = vpop.f32.mrf.mxu3 }
 0x106   : > { %v438_v20 = vpop.f32.mrf.mxu3 }
 0x10f   : > { %v340_v4 = vpop.f32.mrf.mxu1 }
 0x110   : > { %v345_v13 = vadd.f32 %v340_v4, %v297_v10 }
 0x114   : > { %v388_v5 = vpop.f32.mrf.mxu2 }
 0x115   : > { %v393_v19 = vadd.f32 %v388_v5, %v345_v13 }
 0x117   : > { %v342_v8 = vpop.f32.mrf.mxu1  ;;  %v441_v22 = vadd.f32 %v436_v9, %v393_v19 }
 0x118   : > { %v346_v16 = vadd.f32 %v342_v8, %v298_v14 }
 0x11c   : > { %v390_v12 = vpop.f32.mrf.mxu2 }
 0x11d   : > { %v394_v18 = vadd.f32 %v390_v12, %v346_v16 }
 0x11e   : > { %v484_v15 = vpop.f32.mrf.mxu0 }
 0x11f   : > { %v532_v17 = vpop.f32.mrf.mxu1  ;;  %v442_v23 = vadd.f32 %v438_v20, %v394_v18  ;;  %v489_v25 = vadd.f32 %v484_v15, %v441_v22 }
 0x121   : > { %v537_v28 = vadd.f32 %v532_v17, %v489_v25 }
 0x124   : > { %v580_v21 = vpop.f32.mrf.mxu2 }
 0x125   : > { %v585_v31 = vadd.f32 %v580_v21, %v537_v28 }
 0x126   : > { %v486_v24 = vpop.f32.mrf.mxu0 }
 0x127   : > { %v490_v26 = vadd.f32 %v486_v24, %v442_v23  ;;  %v534_v27 = vpop.f32.mrf.mxu1 }
 0x129   : > { %v538_v29 = vadd.f32 %v534_v27, %v490_v26 }
 0x12c   : > { %v582_v30 = vpop.f32.mrf.mxu2 }
 0x12d   : > { %v586_v32 = vadd.f32 %v582_v30, %v538_v29 }
 0x12f   : > { %v855_v33 = vpack.c.bf16 %v586_v32, %v585_v31 }
 0x131   : > { %856 = vst [vmem:[%s246_s24] sm:$0xff] %v855_v33  }
 0x132 PF: > { %s13_s14 = sadd.s32 1, %s912_s14   ;;  %s1044_s12 = smov %s908_s13 }
 0x133   : > { %p10_p5 = scmp.ge.s32.totalorder %s13_s14, 4   ;;  %s1045_s13 = smov %s1047_s15 }
 0x135   :  { %12 = sbr.rel (!%p10_p5) target bundleno = 2 (0x2), region = 74 }

</bundles_post_ra>
